<compile_context>
chip_gen: v7x
topology: tpu7x:2x2x1
jax: 0.10.0
libtpu: 0.0.40
codegen_flags: <defaults>
</compile_context>

<pallas_src>
import math

import jax
import jax.numpy as jnp
import numpy as np
from jax.experimental import pallas as pl
from jax.experimental.pallas import tpu as pltpu


def _cdiv(a, b):
    return -(-a // b)


def _round_up(a, b):
    return _cdiv(a, b) * b


def _make_acnn_kernel(num_layers, n_sub, v_sub, m_sub):
    """MLP (ReLU between layers, Dropout = identity in eval) on lane-dense (D, v_sub) activation
    sub-chunks, followed by a per-molecule segment sum as a one-hot MXU contraction."""

    def kernel(*refs):
        # ref order: x_tile, segT, W_0..W_{L-1}, b_0..b_{L-1}, out
        x_ref, seg_ref = refs[0], refs[1]
        w_refs = refs[2:2 + num_layers]
        b_refs = refs[2 + num_layers:2 + 2 * num_layers]
        out_ref = refs[-1]

        for s in range(n_sub):                               # statically unrolled sub-chunks
            h = x_ref[:, s * v_sub:(s + 1) * v_sub]          # bf16 (D, v_sub), atoms in lanes
            for i in range(num_layers):
                # bf16 x bf16 matmul, f32 accumulation; bias add + ReLU in f32.
                z = jnp.dot(w_refs[i][...], h,
                            preferred_element_type=jnp.float32) + b_refs[i][...]
                if i < num_layers - 1:
                    z = jnp.maximum(z, 0.0)                  # ReLU; Dropout = identity (eval)
                h = z.astype(jnp.bfloat16)
            # Per-molecule sum of the (num_tasks, v_sub) per-atom outputs via a one-hot
            # contraction on the MXU -> lane-dense (num_tasks, m_sub) output slab.
            out_ref[:, s * m_sub:(s + 1) * m_sub] = jnp.dot(
                h, seg_ref[...], preferred_element_type=jnp.float32)

    return kernel


def _plan_tiles(batch_size, atoms_per_mol, d_in, target_tile_atoms=16384,
                seg_budget_bytes=1 << 20, stream_buf_budget_bytes=8 << 20):
    """Returns (m_sub, tile_m, num_tiles, b_pad).

    m_sub : molecules per in-kernel sub-chunk (one-hot is (m_sub*apm, m_sub) bf16)
    tile_m: molecules per streamed grid tile (multiple of m_sub; multiple of 128 if multi-tile)
    """
    V = batch_size * atoms_per_mol
    # Tiny problems: one tile, one sub-chunk, zero padding (blocks == full array dims, so the
    # (8,128) block constraints are satisfied via the "equals full dim" escape).
    if V <= 2048 and batch_size <= 512:
        return batch_size, batch_size, 1, batch_size

    # Sub-chunk granule: v_sub = m_sub*atoms_per_mol must be a multiple of 128 (lanes); grow
    # m_sub (power-of-two multiple of the minimal granule) while the one-hot stays small.
    g = 128 // math.gcd(atoms_per_mol, 128)
    m_sub = g
    while (m_sub * 2 <= 512
           and (m_sub * 2) * atoms_per_mol * (m_sub * 2) * 2 <= seg_budget_bytes):
        m_sub *= 2
    v_sub = m_sub * atoms_per_mol

    # Molecules per streamed tile: target ~target_tile_atoms atoms, whole sub-chunks, capped so
    # one bf16 stream buffer stays inside the per-buffer budget (v7x has only 64 MiB VMEM).
    max_tile_atoms = max(v_sub, stream_buf_budget_bytes // (2 * d_in) // v_sub * v_sub)
    tgt_atoms = min(max(v_sub, (target_tile_atoms // v_sub) * v_sub), max_tile_atoms)
    tile_m = (tgt_atoms // v_sub) * m_sub

    b_pad = _round_up(batch_size, m_sub)
    if tile_m >= b_pad:
        return m_sub, b_pad, 1, b_pad                        # single tile covers padded batch

    # Multi-tile: lane-dense output blocks need tile_m % 128 == 0 (m_sub is a power of two).
    m_align = max(m_sub, 128)
    tile_m = _round_up(tile_m, m_align)
    num_tiles = _cdiv(batch_size, tile_m)
    if num_tiles > 1 and num_tiles % 2 == 1:
        # Prefer an even tile count (v7x: 2 TensorCores) when it does not create a tile made
        # purely of padding (which would cost a full extra HBM+compute pass on v5e/v6e).
        nt2 = num_tiles + 1
        tm2 = _round_up(_cdiv(batch_size, nt2), m_align)
        if _cdiv(batch_size, tm2) == nt2:
            tile_m, num_tiles = tm2, nt2
    b_pad = num_tiles * tile_m
    return m_sub, tile_m, num_tiles, b_pad


def acnn_predictor_forward(batch_size, protein_conv_out, weights, biases, num_tasks,
                           *, target_tile_atoms=16384, conv_out_is_bf16_transposed=False):
    """JAX wrapper mirroring ACNNPredictor.forward(batch_size, protein_conv_out) (split_idx=None).

    weights: list of (out_features, in_features) arrays (PyTorch nn.Linear.weight layout)
    biases : list of (out_features,) arrays
    protein_conv_out: (V, D) float32 (module layout), or (D, V) bfloat16 when
                      conv_out_is_bf16_transposed=True (the layout a fused upstream conv emits).
    """
    if conv_out_is_bf16_transposed:
        xT = protein_conv_out                                # (D, V) bf16, no wrapper passes
        D, V = xT.shape
    else:
        V, D = protein_conv_out.shape
        # TODO(synk): ideally the upstream atomic-conv kernel emits (D, V) bf16 directly; until
        # then cast to bf16 *before* transposing so the transpose moves half the bytes.
        xT = jnp.transpose(protein_conv_out.astype(jnp.bfloat16))
    assert V % batch_size == 0, "V must be divisible by batch_size (split_idx=None path)"
    atoms_per_mol = V // batch_size
    num_layers = len(weights)

    m_sub, tile_m, num_tiles, b_pad = _plan_tiles(
        batch_size, atoms_per_mol, D, target_tile_atoms)
    n_sub = tile_m // m_sub
    v_sub = m_sub * atoms_per_mol
    tile_v = tile_m * atoms_per_mol
    v_pad = b_pad * atoms_per_mol
    if v_pad > V:
        # Padding adds whole fake (zero) molecules past `batch_size`; sliced off after the call.
        xT = jnp.pad(xT, ((0, 0), (0, v_pad - V)))

    # Small resident transposed one-hot: segT[v, m] = 1 iff atom v (within a sub-chunk) belongs
    # to sub-chunk molecule m.  Exact in bf16.
    seg_np = (np.arange(v_sub)[:, None] // atoms_per_mol == np.arange(m_sub)[None, :])
    segT = jnp.asarray(seg_np, jnp.bfloat16)                 # (v_sub, m_sub)

    w_bf = [jnp.asarray(w, jnp.bfloat16) for w in weights]               # (out, in) bf16 MXU
    b_f32 = [jnp.asarray(b, jnp.float32).reshape(-1, 1) for b in biases]  # (out, 1) f32

    in_specs = (
        [pl.BlockSpec((D, tile_v), lambda i: (0, i)),        # streamed activation tile
         pl.BlockSpec(segT.shape, lambda i: (0, 0))]         # resident one-hot
        + [pl.BlockSpec(w.shape, lambda i: (0, 0)) for w in w_bf]   # resident weights
        + [pl.BlockSpec(b.shape, lambda i: (0, 0)) for b in b_f32]  # resident biases
    )
    out_specs = pl.BlockSpec((num_tasks, tile_m), lambda i: (0, i))  # lane-dense output blocks

    # Tight VMEM footprint: double-buffered stream + (double-buffered) resident params +
    # per-sub-chunk f32 intermediates, plus headroom.  Stays well under v7x's 64 MiB.
    h_max = max([D] + [w.shape[0] for w in w_bf])
    est = (2 * D * tile_v * 2                        # x tile, bf16, double-buffered
           + 2 * int(segT.size) * 2
           + 2 * sum(int(w.size) for w in w_bf) * 2
           + 2 * sum(int(b.size) for b in b_f32) * 4
           + 2 * num_tasks * tile_m * 4              # output block, double-buffered
           + 3 * h_max * v_sub * 4)                  # live f32 MLP intermediates (per sub-chunk)
    vmem_limit = int(min(max(1.5 * est + (2 << 20), 16 << 20), 48 << 20))

    out_t = pl.pallas_call(
        _make_acnn_kernel(num_layers, n_sub, v_sub, m_sub),
        out_shape=jax.ShapeDtypeStruct((num_tasks, b_pad), jnp.float32),
        grid=(num_tiles,),
        in_specs=in_specs,
        out_specs=out_specs,
        compiler_params=pltpu.CompilerParams(
            dimension_semantics=("parallel",),
            vmem_limit_bytes=vmem_limit),
    )(xT, segT, *w_bf, *b_f32)

    return jnp.transpose(out_t[:, :batch_size])              # (batch_size, num_tasks)


def _truncated_normal(key, shape, std):
    # Same distribution as the reference truncated_normal_ helper (|z| < 2 before scaling).
    return jax.random.truncated_normal(key, -2.0, 2.0, shape, jnp.float32) * std


def init_acnn_predictor_params(key, in_size, hidden_sizes, weight_init_stddevs,
                               features_to_use, num_tasks):
    """Deterministic parameter init matching ACNNPredictor.__init__ shapes.
    Weights are stored in PyTorch layout (out_features, in_features)."""
    if features_to_use is not None:
        in_size = in_size * len(features_to_use)

    dims = [in_size] + list(hidden_sizes) + [num_tasks]
    stds = list(weight_init_stddevs[:len(hidden_sizes)]) + [weight_init_stddevs[-1]]

    weights, biases = [], []
    for i in range(len(dims) - 1):
        key, wk, bk = jax.random.split(key, 3)
        d_in, d_out = dims[i], dims[i + 1]
        w = _truncated_normal(wk, (d_out, d_in), stds[i])
        bound = 1.0 / np.sqrt(d_in)                  # PyTorch default uniform bias init bound
        b = jax.random.uniform(bk, (d_out,), jnp.float32, -bound, bound)
        weights.append(w)
        biases.append(b)
    return weights, biases


def _reference_forward(batch_size, x, weights, biases, num_tasks):
    """Pure-f32 reference with the true module semantics (no bf16 rounding)."""
    h = jnp.asarray(x, jnp.float32)
    for i, (w, b) in enumerate(zip(weights, biases)):
        h = h @ jnp.asarray(w, jnp.float32).T + jnp.asarray(b, jnp.float32)
        if i < len(weights) - 1:
            h = jnp.maximum(h, 0.0)
    return h.reshape(batch_size, -1, num_tasks).sum(axis=1)


if __name__ == "__main__":
    key = jax.random.PRNGKey(0)

    # Module-consistent configuration.
    atoms_per_mol = 8
    K, T = 4, 4                               # radial filters, atomic-number types -> D = 16
    hidden_sizes = [32, 32]
    weight_init_stddevs = [0.1, 0.1, 0.01]
    num_tasks = 1

    k_param, k_data1, k_data2 = jax.random.split(key, 3)
    weights, biases = init_acnn_predictor_params(
        k_param, K, hidden_sizes, weight_init_stddevs, list(range(T)), num_tasks)

    fwd = jax.jit(acnn_predictor_forward, static_argnums=(0, 4),
                  static_argnames=("target_tile_atoms", "conv_out_is_bf16_transposed"))

    # NOTE: the kernel computes the MLP with bf16 MXU inputs (f32 accumulation); the comparison
    # below is against the exact f32 reference, hence the bf16-level tolerances.

    # ---- Test 1: tiny shapes (single tile, single sub-chunk, no padding) ----
    batch_size = 2
    V1 = batch_size * atoms_per_mol
    x1 = jax.random.normal(k_data1, (V1, K * T), jnp.float32)
    out1 = jax.block_until_ready(fwd(batch_size, x1, weights, biases, num_tasks))
    ref1 = _reference_forward(batch_size, x1, weights, biases, num_tasks)
    np.testing.assert_allclose(np.asarray(out1), np.asarray(ref1), rtol=2e-2, atol=2e-2)
    assert out1.shape == (batch_size, num_tasks)

    # ---- Test 2: exercises the streamed multi-tile path (padding, 2 grid tiles, in-kernel
    #      sub-chunking) and the pre-transposed bf16 fast-path layout. ----
    b2 = 384
    V2 = b2 * atoms_per_mol
    x2 = jax.random.normal(k_data2, (V2, K * T), jnp.float32)
    x2_t = jnp.transpose(x2.astype(jnp.bfloat16))            # (D, V) bf16 "upstream" layout
    out2 = jax.block_until_ready(
        fwd(b2, x2_t, weights, biases, num_tasks,
            target_tile_atoms=2048, conv_out_is_bf16_transposed=True))
    ref2 = _reference_forward(b2, x2, weights, biases, num_tasks)
    np.testing.assert_allclose(np.asarray(out2), np.asarray(ref2), rtol=2e-2, atol=2e-2)
    assert out2.shape == (b2, num_tasks)

    print("KERNEL_OK")
</pallas_src>

<mosaic_0001>
module attributes {stable_mosaic.version = 11 : i64} {
  func.func @kernel(%arg0: i32, %arg1: memref<16x16xbf16, #tpu.memory_space<vmem>>, %arg2: memref<16x2xbf16, #tpu.memory_space<vmem>>, %arg3: memref<32x16xbf16, #tpu.memory_space<vmem>>, %arg4: memref<32x32xbf16, #tpu.memory_space<vmem>>, %arg5: memref<1x32xbf16, #tpu.memory_space<vmem>>, %arg6: memref<32x1xf32, #tpu.memory_space<vmem>>, %arg7: memref<32x1xf32, #tpu.memory_space<vmem>>, %arg8: memref<1x1xf32, #tpu.memory_space<vmem>>, %arg9: memref<1x2xf32, #tpu.memory_space<vmem>>) attributes {dimension_semantics = [#tpu.dimension_semantics<parallel>], iteration_bounds = array<i64: 1>, scalar_prefetch = 0 : i64, scratch_operands = 0 : i64, tpu.core_type = #tpu.core_type<tc>, window_params = [{transform_indices = @transform_0, window_bounds = array<i64: 16, 16>}, {pipeline_mode = #tpu.pipeline_mode<synchronous>, transform_indices = @transform_1, window_bounds = array<i64: 16, 2>}, {pipeline_mode = #tpu.pipeline_mode<synchronous>, transform_indices = @transform_2, window_bounds = array<i64: 32, 16>}, {pipeline_mode = #tpu.pipeline_mode<synchronous>, transform_indices = @transform_3, window_bounds = array<i64: 32, 32>}, {pipeline_mode = #tpu.pipeline_mode<synchronous>, transform_indices = @transform_4, window_bounds = array<i64: 1, 32>}, {pipeline_mode = #tpu.pipeline_mode<synchronous>, transform_indices = @transform_5, window_bounds = array<i64: 32, 1>}, {pipeline_mode = #tpu.pipeline_mode<synchronous>, transform_indices = @transform_6, window_bounds = array<i64: 32, 1>}, {pipeline_mode = #tpu.pipeline_mode<synchronous>, transform_indices = @transform_7, window_bounds = array<i64: 1, 1>}, {transform_indices = @transform_8, window_bounds = array<i64: 1, 2>}]} {
    %c0 = arith.constant 0 : index
    %c0_0 = arith.constant 0 : index
    %0 = vector.load %arg1[%c0, %c0_0] : memref<16x16xbf16, #tpu.memory_space<vmem>>, vector<16x16xbf16>
    %c0_1 = arith.constant 0 : index
    %c0_2 = arith.constant 0 : index
    %1 = vector.load %arg3[%c0_1, %c0_2] : memref<32x16xbf16, #tpu.memory_space<vmem>>, vector<32x16xbf16>
    %cst = arith.constant dense<0.000000e+00> : vector<32x16xf32>
    %2 = tpu.matmul %1, %0, %cst {dimension_numbers = #tpu.dot_dimension_numbers<[1], [0], [0], [1], [0, 0, 1, 1], [], []>} : vector<32x16xbf16>, vector<16x16xbf16>, vector<32x16xf32> -> vector<32x16xf32>
    %c0_3 = arith.constant 0 : index
    %c0_4 = arith.constant 0 : index
    %3 = vector.load %arg6[%c0_3, %c0_4] : memref<32x1xf32, #tpu.memory_space<vmem>>, vector<32x1xf32>
    %4 = vector.broadcast %3 : vector<32x1xf32> to vector<32x16xf32>
    %5 = arith.addf %2, %4 : vector<32x16xf32>
    %cst_5 = arith.constant 0.000000e+00 : f32
    %6 = vector.broadcast %cst_5 : f32 to vector<32x16xf32>
    %7 = arith.maximumf %5, %6 : vector<32x16xf32>
    %8 = arith.truncf %7 : vector<32x16xf32> to vector<32x16xbf16>
    %c0_6 = arith.constant 0 : index
    %c0_7 = arith.constant 0 : index
    %9 = vector.load %arg4[%c0_6, %c0_7] : memref<32x32xbf16, #tpu.memory_space<vmem>>, vector<32x32xbf16>
    %cst_8 = arith.constant dense<0.000000e+00> : vector<32x16xf32>
    %10 = tpu.matmul %9, %8, %cst_8 {dimension_numbers = #tpu.dot_dimension_numbers<[1], [0], [0], [1], [0, 0, 1, 1], [], []>} : vector<32x32xbf16>, vector<32x16xbf16>, vector<32x16xf32> -> vector<32x16xf32>
    %c0_9 = arith.constant 0 : index
    %c0_10 = arith.constant 0 : index
    %11 = vector.load %arg7[%c0_9, %c0_10] : memref<32x1xf32, #tpu.memory_space<vmem>>, vector<32x1xf32>
    %12 = vector.broadcast %11 : vector<32x1xf32> to vector<32x16xf32>
    %13 = arith.addf %10, %12 : vector<32x16xf32>
    %cst_11 = arith.constant 0.000000e+00 : f32
    %14 = vector.broadcast %cst_11 : f32 to vector<32x16xf32>
    %15 = arith.maximumf %13, %14 : vector<32x16xf32>
    %16 = arith.truncf %15 : vector<32x16xf32> to vector<32x16xbf16>
    %c0_12 = arith.constant 0 : index
    %c0_13 = arith.constant 0 : index
    %17 = vector.load %arg5[%c0_12, %c0_13] : memref<1x32xbf16, #tpu.memory_space<vmem>>, vector<1x32xbf16>
    %cst_14 = arith.constant dense<0.000000e+00> : vector<1x16xf32>
    %18 = tpu.matmul %17, %16, %cst_14 {dimension_numbers = #tpu.dot_dimension_numbers<[1], [0], [0], [1], [0, 0, 1, 1], [], []>} : vector<1x32xbf16>, vector<32x16xbf16>, vector<1x16xf32> -> vector<1x16xf32>
    %c0_15 = arith.constant 0 : index
    %c0_16 = arith.constant 0 : index
    %19 = vector.load %arg8[%c0_15, %c0_16] : memref<1x1xf32, #tpu.memory_space<vmem>>, vector<1x1xf32>
    %20 = vector.broadcast %19 : vector<1x1xf32> to vector<1x16xf32>
    %21 = arith.addf %18, %20 : vector<1x16xf32>
    %22 = arith.truncf %21 : vector<1x16xf32> to vector<1x16xbf16>
    %c0_17 = arith.constant 0 : index
    %c0_18 = arith.constant 0 : index
    %23 = vector.load %arg2[%c0_17, %c0_18] : memref<16x2xbf16, #tpu.memory_space<vmem>>, vector<16x2xbf16>
    %cst_19 = arith.constant dense<0.000000e+00> : vector<1x2xf32>
    %24 = tpu.matmul %22, %23, %cst_19 {dimension_numbers = #tpu.dot_dimension_numbers<[1], [0], [0], [1], [0, 0, 1, 1], [], []>} : vector<1x16xbf16>, vector<16x2xbf16>, vector<1x2xf32> -> vector<1x2xf32>
    %c0_20 = arith.constant 0 : index
    %c0_21 = arith.constant 0 : index
    %25 = vector.load %arg9[%c0_20, %c0_21] : memref<1x2xf32, #tpu.memory_space<vmem>>, vector<1x2xf32>
    tpu.vector_store %arg9[%c0_20, %c0_21], %24 {strides = array<i32>} : memref<1x2xf32, #tpu.memory_space<vmem>>, vector<1x2xf32>,
    return
  }
  func.func @transform_0(%arg0: i32) -> (i32, i32) {
    %c0_i32 = arith.constant 0 : i32
    %c0_i32_0 = arith.constant 0 : i32
    return %c0_i32, %arg0 : i32, i32
  }
  func.func @transform_1(%arg0: i32) -> (i32, i32) {
    %c0_i32 = arith.constant 0 : i32
    %c0_i32_0 = arith.constant 0 : i32
    %c0_i32_1 = arith.constant 0 : i32
    return %c0_i32, %c0_i32_0 : i32, i32
  }
  func.func @transform_2(%arg0: i32) -> (i32, i32) {
    %c0_i32 = arith.constant 0 : i32
    %c0_i32_0 = arith.constant 0 : i32
    %c0_i32_1 = arith.constant 0 : i32
    return %c0_i32, %c0_i32_0 : i32, i32
  }
  func.func @transform_3(%arg0: i32) -> (i32, i32) {
    %c0_i32 = arith.constant 0 : i32
    %c0_i32_0 = arith.constant 0 : i32
    %c0_i32_1 = arith.constant 0 : i32
    return %c0_i32, %c0_i32_0 : i32, i32
  }
  func.func @transform_4(%arg0: i32) -> (i32, i32) {
    %c0_i32 = arith.constant 0 : i32
    %c0_i32_0 = arith.constant 0 : i32
    %c0_i32_1 = arith.constant 0 : i32
    return %c0_i32, %c0_i32_0 : i32, i32
  }
  func.func @transform_5(%arg0: i32) -> (i32, i32) {
    %c0_i32 = arith.constant 0 : i32
    %c0_i32_0 = arith.constant 0 : i32
    %c0_i32_1 = arith.constant 0 : i32
    return %c0_i32, %c0_i32_0 : i32, i32
  }
  func.func @transform_6(%arg0: i32) -> (i32, i32) {
    %c0_i32 = arith.constant 0 : i32
    %c0_i32_0 = arith.constant 0 : i32
    %c0_i32_1 = arith.constant 0 : i32
    return %c0_i32, %c0_i32_0 : i32, i32
  }
  func.func @transform_7(%arg0: i32) -> (i32, i32) {
    %c0_i32 = arith.constant 0 : i32
    %c0_i32_0 = arith.constant 0 : i32
    %c0_i32_1 = arith.constant 0 : i32
    return %c0_i32, %c0_i32_0 : i32, i32
  }
  func.func @transform_8(%arg0: i32) -> (i32, i32) {
    %c0_i32 = arith.constant 0 : i32
    %c0_i32_0 = arith.constant 0 : i32
    return %c0_i32, %arg0 : i32, i32
  }
}

</mosaic_0001>

<bundles_post_ra>
// kernel: acnn_predictor_forward.1
= control target key start
LH: loop header
LB: loop body
LE: loop exit
PB: predicated region body
PF: predicated region fallthrough
CT: control target
= control target key end

     0   :  { %s566_s0 = inlined_call_operand.vmem [shape: bf16[16,16], index: 0, kind: input, shape index: {}]   ;;  %s567_s1 = inlined_call_operand.vmem [shape: bf16[16,2], index: 1, kind: input, shape index: {}]   ;;  %s568_s2 = inlined_call_operand.vmem [shape: bf16[32,16], index: 2, kind: input, shape index: {}]   ;;  %s569_s3 = inlined_call_operand.vmem [shape: bf16[32,32], index: 3, kind: input, shape index: {}]   ;;  %s570_s4 = inlined_call_operand.vmem [shape: bf16[1,32], index: 4, kind: input, shape index: {}]   ;;  %s571_s5 = inlined_call_operand.vmem [shape: f32[32,1], index: 5, kind: input, shape index: {}]   ;;  %s572_s6 = inlined_call_operand.vmem [shape: f32[32,1], index: 6, kind: input, shape index: {}]   ;;  %s573_s7 = inlined_call_operand.<no memory space> [shape: f32[1,1], index: 7, kind: input, shape index: {}]   ;;  %s574_s8 = inlined_call_operand.hbm [shape: f32[1,2], index: 8, kind: output, shape index: {}]  }
   0x1   :  { %v13_v0 = vstv %s573_s7 }
   0x2   :  { %14 = vst [vmem:[#allocation2] sm:$0x1] %v13_v0 }
   0x3   :  { %v421_v1 = vld [vmem:[%s566_s0] sm:$0xff]   ;;  %vm79_vm0 = vcmask 130048   ;;  %v423_v3 = vld [vmem:[%s568_s2 + $0x8] sm:$0xff]   ;;  %v451_v4 = vmov 0   ;;  %v41_v6 = vld [vmem:[%s571_s5 + $0x10] sm:$0xff] }
   0x4   :  { %v422_v2 = vld [vmem:[%s568_s2] sm:$0xff]   ;;  %387 = vmatprep.subr.bf16.mxu0 %v421_v1  ;;  %419 = vset.pattern.permute.xlu0 %v451_v4  ;;  %v40_v7 = vld [vmem:[%s571_s5 + $0x8] sm:$0xff]  ;;  %v42_v8 = vld [vmem:[%s571_s5 + $0x18] sm:$0xff] }
   0x5   :  { %388 = vmatpush3.bf16.msra.mxu0 %v421_v1  ;;  %389 = vmatprep.mubr.msk.bf16.mxu0 %vm79_vm0, %v422_v2  ;;  %v39_v5 = vld [vmem:[%s571_s5] sm:$0xff] }
   0x6   :  { %45 = vperm.xlu0 %419, %v39_v5   ;;  %420 = vset.pattern.permute.xlu1 %v451_v4 }
   0x7   :  { %55 = vperm.xlu1 %420, %v41_v6  }
   0x8   :  { %390 = vmatmul.mubr.msk.bf16.vlgmr.msra.gmra.mrb[0].mxu0 %vm79_vm0, %v423_v3 }
   0xa   :  { %50 = vperm.xlu0 %419, %v40_v7  }
   0xb   :  { %15 = vsyncpa [#allocation4], 0  ;;  %v145_v9 = vld [vmem:[%s572_s6] sm:$0xff]  ;;  %60 = vperm.xlu1 %420, %v42_v8   ;;  %v146_v10 = vld [vmem:[%s572_s6 + $0x8] sm:$0xff]  ;;  %vm179_vm1 = vcmask 261120   ;;  %v452_v34 = vmov 0.0   ;;  %v248_v55 = vlaneseq }
   0xc   :  { %v147_v11 = vld [vmem:[%s572_s6 + $0x10] sm:$0xff]  ;;  %v148_v12 = vld [vmem:[%s572_s6 + $0x18] sm:$0xff]  ;;  %v242_v13 = vld [vmem:[#allocation2] sm:$0x1]  ;;  %401 = vmatprep.subr.bf16.mxu0 %v452_v34  ;;  %vm453_vm2 = vmmov 0   ;;  %s454_s30 = smov [#allocation3]  }
   0xd   :  { %v424_v14 = vld [vmem:[%s569_s3] sm:$0xff]   ;;  %v425_v33 = vld [vmem:[%s569_s3 + $0x8] sm:$0xff]   ;;  %405 = vmatprep.mubr.msk.bf16.mxu0 %vm453_vm2, %v452_v34  ;;  %v249_v56 = vshrl.u32 %v248_v55, 7  ;;  %s355_s9 = sshll.u32 %s454_s30, 4  ;;  %vm347_vm3 = vcmask 8192   ;;  %s356_s9 = int_to_ptr.vmem [resolvable:$true] %s355_s9 }
   0xe   :  { %151 = vperm.xlu0 %419, %v145_v9   ;;  %397 = vmatprep.mubr.msk.bf16.mxu1 %vm179_vm1, %v424_v14  ;;  %v426_v35 = vld [vmem:[%s567_s1] sm:$0xff]   ;;  %s431_s10 = scalar_lea.vmem %s356_s9, 32  ;;  %p432_p1 = scmp.lt.s32.totalorder %s356_s9, %s356_s9 }
   0xf   :  { %156 = vperm.xlu1 %420, %v146_v10   ;;  %v241_v54 = vld [vmem:[%s570_s4] sm:$0x1]  ;;  %v250_v57 = vsub.s32 0, %v249_v56  ;;  %s427_s4 = scalar_lea.vmem %s356_s9, 16 }
  0x10   :  { %p428_p0 = scmp.ne.s32.totalorder %s356_s9, %s427_s4  ;;  %p433_p2 = scmp.lt.s32.totalorder %s431_s10, %s427_s4 }
  0x12   :  { %161 = vperm.xlu0 %419, %v147_v11   ;;  %p434_p3 = por %p433_p2, %p432_p1 }
  0x13   :  { %166 = vperm.xlu1 %420, %v148_v12  }
  0x14   :  { %p435_p4 = pnand %p434_p3, %p428_p0 }
  0x16   :  { %245 = vperm.xlu0 %419, %v242_v13  }
  0x85   :  { %v46_v16 = vpop.permute.xlu0 %45 }
  0x86   :  { %v56_v15 = vpop.permute.xlu1 %55 }
  0x89   :  { %v51_v23 = vpop.permute.xlu0 %50 }
  0x8a   :  { %v61_v20 = vpop.permute.xlu1 %60 }
  0x8d   :  { %v152_v36 = vpop.permute.xlu0 %151 }
  0x8e   :  { %v157_v37 = vpop.permute.xlu1 %156 }
  0x91   :  { %v162_v38 = vpop.permute.xlu0 %161 }
  0x92   :  { %v167_v42 = vpop.permute.xlu1 %166 }
  0x95   :  { %v246_v58 = vpop.permute.xlu0 %245 }
  0x96   :  { %v251_v59 = vrot.slane %v246_v58, %v250_v57 }
  0xdb   :  { %v391_v17 = vpop.f32.mrb[0].mxu0 }
  0xdc   :  { %v129_v18 = vadd.f32 %v391_v17, %v56_v15  ;;  %v120_v19 = vpop.f32.mrb[1].mxu0 }
  0xdd   :  { %v121_v21 = vadd.f32 %v120_v19, %v46_v16  ;;  %v392_v22 = vpop.f32.mrb[2].mxu0 }
  0xde   :  { %v132_v24 = vadd.f32 %v392_v22, %v61_v20  ;;  %v123_v25 = vpop.f32.mrb[3].mxu0  ;;  %v137_v27 = vmax.f32 %v129_v18, 0.0 }
  0xdf   :  { %v124_v26 = vadd.f32 %v123_v25, %v51_v23  ;;  %v135_v29 = vmax.f32 %v121_v21, 0.0 }
  0xe0   :  { %v138_v28 = vmax.f32 %v132_v24, 0.0 }
  0xe1   :  { %v136_v30 = vmax.f32 %v124_v26, 0.0 }
  0xe2   :  { %v140_v31 = vpack.c.bf16 %v138_v28, %v137_v27 }
  0xe3   :  { %v139_v32 = vpack.c.bf16 %v136_v30, %v135_v29 }
  0xe5   :  { %393 = vmatprep.subr.bf16.mxu1 %v139_v32 }
  0xe6   :  { %394 = vmatpush3.bf16.msra.mxu1 %v139_v32 }
  0xe7   :  { %395 = vmatprep.subr.bf16.mxu1 %v140_v31 }
  0xea   :  { %396 = vmatpush3.bf16.msra.mxu1 %v140_v31 }
  0xeb   :  { %409 = vmatprep.subr.bf16.mxu1 %v452_v34 }
  0xed   :  { %398 = vmatmul.mubr.msk.bf16.vlgmr.msra.gmra.mrb[0].mxu1 %vm179_vm1, %v425_v33 }
  0xee   :  { %411 = vmatprep.mubr.msk.bf16.mxu1 %vm453_vm2, %v452_v34  ;;  %410 = vmatpush3.bf16.msra.mxu1 %v426_v35 }
 0x1c0   :  { %v399_v39 = vpop.f32.mrb[0].mxu1 }
 0x1c1   :  { %v229_v40 = vadd.f32 %v399_v39, %v162_v38  ;;  %v220_v41 = vpop.f32.mrb[1].mxu1 }
 0x1c2   :  { %v221_v43 = vadd.f32 %v220_v41, %v152_v36  ;;  %v400_v44 = vpop.f32.mrb[2].mxu1 }
 0x1c3   :  { %v232_v45 = vadd.f32 %v400_v44, %v167_v42  ;;  %v223_v46 = vpop.f32.mrb[3].mxu1  ;;  %v237_v48 = vmax.f32 %v229_v40, 0.0 }
 0x1c4   :  { %v224_v47 = vadd.f32 %v223_v46, %v157_v37  ;;  %v235_v50 = vmax.f32 %v221_v43, 0.0 }
 0x1c5   :  { %v238_v49 = vmax.f32 %v232_v45, 0.0 }
 0x1c6   :  { %v236_v51 = vmax.f32 %v224_v47, 0.0 }
 0x1c7   :  { %v240_v52 = vpack.c.bf16 %v238_v49, %v237_v48 }
 0x1c8   :  { %v239_v53 = vpack.c.bf16 %v236_v51, %v235_v50 }
 0x1ca   :  { %402 = vmatpush3.bf16.msra.mxu0 %v239_v53 }
 0x1cb   :  { %403 = vmatprep.subr.bf16.mxu0 %v452_v34 }
 0x1ce   :  { %404 = vmatpush3.bf16.msra.mxu0 %v240_v52 }
 0x1d1   :  { %406 = vmatmul.mubr.msk.bf16.vlgmr.msra.gmra.mrb[4].mxu0 %vm179_vm1, %v241_v54 }
 0x2a4   :  { %v289_v60 = vpop.f32.mrb[4].mxu0 }
 0x2a5   :  { %v290_v61 = vadd.f32 %v289_v60, %v251_v59  ;;  %v407_v62 = vpop.f32.mrb[5].mxu0 }
 0x2a6   :  { %v292_v63 = vpop.f32.mrb[6].mxu0 }
 0x2a7   :  { %v295_v0 = vpack.c.bf16 %v290_v61, %v290_v61  ;;  %v408_v1 = vpop.f32.mrb[7].mxu0 }
 0x2a9   :  { %412 = vmatmul.mubr.msk.bf16.vlgmr.msra.gmra.mrb[4].mxu1 %vm79_vm0, %v295_v0 }
 0x37c   :  { %v341_v2 = vpop.f32.mrb[4].mxu1 }
 0x37d   :  { %348 = vst.msk [vmem:[#allocation3] sm:$0x1] %vm347_vm3, %v341_v2  ;;  %v413_v3 = vpop.f32.mrb[5].mxu1 }
 0x37e   :  { %v344_v4 = vpop.f32.mrb[6].mxu1 }
 0x37f   :  { %438 = shalt.err (!%p435_p4)
}
 0x380   :  { %s439_s7 = scalar_lea.hbm %s574_s8, 16 }
 0x381   :  { %p440_p5 = scmp.ne.s32.totalorder %s574_s8, %s439_s7  ;;  %p443_p6 = scmp.lt.u32.totalorder %s439_s7, %s574_s8 }
 0x383   :  { %p445_p7 = pnand %p443_p6, %p440_p5 }
 0x385   :  { %448 = shalt.err (!%p445_p7)
}
 0x386   :  { %358 = dma.vmem_to_hbm [thread:$0]  %s356_s9, 16, %s574_s8, [#allocation4]   ;;  %v414_v5 = vpop.f32.mrb[7].mxu1 }
 0x387   :  { %449 = dma.done.wait [#allocation4], 16  }
 0x388   :  { %450 = vsyncadd [#allocation4], 4294967280 }
 0x389   :  { %362 = vsyncpa [#allocation4], 1 }

</bundles_post_ra>
